<compile_context>
chip_gen: v5e
topology: v5e:2x2
jax: 0.10.0
libtpu: 0.0.40
codegen_flags: <defaults>
</compile_context>

<pallas_src>
import jax
import jax.numpy as jnp
from jax.experimental import pallas as pl
from jax.experimental.pallas import tpu as pltpu

IN_FEATURES = 384


def _round_up(x, m):
    return ((x + m - 1) // m) * m


def _linear_kernel(x_ref, w_ref, b_ref, o_ref):
    # x_ref: (tm, 384)  w_ref: (384, tn)  b_ref: (1, tn)  o_ref: (tm, tn)
    xv = x_ref[...].astype(w_ref.dtype)          # bf16 MXU path when W is bf16
    acc = jnp.dot(xv, w_ref[...], preferred_element_type=jnp.float32)
    o_ref[...] = (acc + b_ref[...]).astype(o_ref.dtype)


def prepare_params(weight, bias, weight_dtype=jnp.bfloat16):
    """One-time parameter prep (NOT on the per-call hot path).

    weight: (out_f, 384) float32  -- PyTorch nn.Linear layout
    bias:   (out_f,)      float32
    Returns (w_t, b2d, out_f):
      w_t: (384, out_f_padded) weight_dtype, pre-transposed + lane-padded to 128
      b2d: (1, out_f_padded)   float32, zero-padded
    """
    out_f, in_f = weight.shape
    assert in_f == IN_FEATURES
    out_fp = _round_up(out_f, 128)
    w_t = jnp.transpose(weight).astype(weight_dtype)          # (384, out_f)
    w_t = jnp.pad(w_t, ((0, 0), (0, out_fp - out_f)))
    b2d = jnp.pad(bias.astype(jnp.float32), (0, out_fp - out_f)).reshape(1, out_fp)
    return w_t, b2d, out_f


def output_decoder(x, w_t, b2d, out_f, *, tn_max=1024):
    """y = x @ W.T + b  (nn.Linear forward) with W stored pre-transposed/padded.

    x:   (B, 384) float32
    w_t: (384, out_f_padded)  (from prepare_params)
    b2d: (1, out_f_padded)    float32
    returns (B, out_f) float32
    """
    B, in_f = x.shape
    in_f2, out_fp = w_t.shape
    assert in_f == in_f2 == IN_FEATURES
    assert out_fp % 128 == 0

    # Batch tile: sublane granule (8) for tiny batches, MXU-sized otherwise.
    tm = 8 if B <= 8 else 128
    Bp = _round_up(B, tm)
    if Bp != B:
        x = jnp.pad(x, ((0, Bp - B), (0, 0)))

    # Out-feature tile: largest multiple of 128 that divides out_fp, <= tn_max.
    tn = 128
    cand = 128
    while cand <= min(tn_max, out_fp):
        if out_fp % cand == 0:
            tn = cand
        cand += 128

    w_itemsize = jnp.dtype(w_t.dtype).itemsize
    bytes_accessed = (Bp * in_f * 4            # x
                      + in_f * out_fp * w_itemsize  # W
                      + out_fp * 4             # bias
                      + Bp * out_fp * 4)       # y

    y = pl.pallas_call(
        _linear_kernel,
        out_shape=jax.ShapeDtypeStruct((Bp, out_fp), jnp.float32),
        grid_spec=pltpu.PrefetchScalarGridSpec(
            num_scalar_prefetch=0,
            grid=(Bp // tm, out_fp // tn),
            in_specs=[
                pl.BlockSpec((tm, in_f), lambda i, j: (i, 0)),
                pl.BlockSpec((in_f, tn), lambda i, j: (0, j)),
                pl.BlockSpec((1, tn), lambda i, j: (0, j)),
            ],
            out_specs=pl.BlockSpec((tm, tn), lambda i, j: (i, j)),
        ),
        compiler_params=pltpu.CompilerParams(
            dimension_semantics=("parallel", "parallel"),
            vmem_limit_bytes=32 * 1024 * 1024,  # safe on v5e/v6e/v7x for tn<=2048
        ),
        cost_estimate=pl.CostEstimate(
            flops=2 * Bp * in_f * out_fp,
            transcendentals=0,
            bytes_accessed=bytes_accessed,
        ),
    )(x, w_t, b2d)

    return y[:B, :out_f]


def init_params(key, out_size, in_size=IN_FEATURES):
    # Mimics PyTorch nn.Linear default init: U(-1/sqrt(in), 1/sqrt(in)).
    kw, kb = jax.random.split(key)
    bound = 1.0 / jnp.sqrt(jnp.float32(in_size))
    weight = jax.random.uniform(kw, (out_size, in_size), jnp.float32, -bound, bound)
    bias = jax.random.uniform(kb, (out_size,), jnp.float32, -bound, bound)
    return weight, bias


if __name__ == "__main__":
    key = jax.random.PRNGKey(0)
    kx, kp = jax.random.split(key)

    B = 2
    OUT_SIZE = 10  # outSize from the module constructor

    x = jax.random.normal(kx, (B, IN_FEATURES), jnp.float32)
    weight, bias = init_params(kp, OUT_SIZE)          # PyTorch layout (out, in)

    # One-time param prep: transpose + pad to 128 lanes + bf16 cast.
    w_t, b2d, out_f = prepare_params(weight, bias)

    y = output_decoder(x, w_t, b2d, out_f)
    y = jax.block_until_ready(y)
    assert y.shape == (B, OUT_SIZE)

    # Reference with matching dtype treatment (bf16 weights, f32 accumulate).
    y_ref = (jnp.dot(x.astype(jnp.bfloat16), weight.T.astype(jnp.bfloat16),
                     preferred_element_type=jnp.float32) + bias)
    assert jnp.allclose(y, y_ref, atol=2e-3, rtol=2e-3)

    # Sanity vs full-f32 nn.Linear math (only delta is bf16 weight quantization).
    y_f32 = x @ weight.T + bias
    assert jnp.allclose(y, y_f32, atol=5e-2, rtol=5e-2)

    print("KERNEL_OK")
</pallas_src>

<mosaic_0001>
module attributes {stable_mosaic.version = 11 : i64} {
  func.func @_linear_kernel(%arg0: i32, %arg1: i32, %arg2: memref<8x384xf32, #tpu.memory_space<vmem>>, %arg3: memref<384x128xbf16, #tpu.memory_space<vmem>>, %arg4: memref<1x128xf32, #tpu.memory_space<vmem>>, %arg5: memref<8x128xf32, #tpu.memory_space<vmem>>) attributes {dimension_semantics = [#tpu.dimension_semantics<parallel>, #tpu.dimension_semantics<parallel>], iteration_bounds = array<i64: 1, 1>, scalar_prefetch = 0 : i64, scratch_operands = 0 : i64, tpu.core_type = #tpu.core_type<tc>, window_params = [{transform_indices = @transform_0, window_bounds = array<i64: 8, 384>}, {transform_indices = @transform_1, window_bounds = array<i64: 384, 128>}, {transform_indices = @transform_2, window_bounds = array<i64: 1, 128>}, {transform_indices = @transform_3, window_bounds = array<i64: 8, 128>}]} {
    %c0 = arith.constant 0 : index
    %c0_0 = arith.constant 0 : index
    %0 = vector.load %arg2[%c0, %c0_0] : memref<8x384xf32, #tpu.memory_space<vmem>>, vector<8x384xf32>
    %1 = arith.truncf %0 : vector<8x384xf32> to vector<8x384xbf16>
    %c0_1 = arith.constant 0 : index
    %c0_2 = arith.constant 0 : index
    %2 = vector.load %arg3[%c0_1, %c0_2] : memref<384x128xbf16, #tpu.memory_space<vmem>>, vector<384x128xbf16>
    %cst = arith.constant dense<0.000000e+00> : vector<8x128xf32>
    %3 = tpu.matmul %1, %2, %cst {dimension_numbers = #tpu.dot_dimension_numbers<[1], [0], [0], [1], [0, 0, 1, 1], [], []>} : vector<8x384xbf16>, vector<384x128xbf16>, vector<8x128xf32> -> vector<8x128xf32>
    %c0_3 = arith.constant 0 : index
    %c0_4 = arith.constant 0 : index
    %4 = vector.load %arg4[%c0_3, %c0_4] : memref<1x128xf32, #tpu.memory_space<vmem>>, vector<1x128xf32>
    %5 = vector.broadcast %4 : vector<1x128xf32> to vector<8x128xf32>
    %6 = arith.addf %3, %5 : vector<8x128xf32>
    %c0_5 = arith.constant 0 : index
    %c0_6 = arith.constant 0 : index
    %7 = vector.load %arg5[%c0_5, %c0_6] : memref<8x128xf32, #tpu.memory_space<vmem>>, vector<8x128xf32>
    tpu.vector_store %arg5[%c0_5, %c0_6], %6 {strides = array<i32>} : memref<8x128xf32, #tpu.memory_space<vmem>>, vector<8x128xf32>,
    return
  }
  func.func @transform_0(%arg0: i32, %arg1: i32) -> (i32, i32) {
    %c0_i32 = arith.constant 0 : i32
    %c0_i32_0 = arith.constant 0 : i32
    return %arg0, %c0_i32 : i32, i32
  }
  func.func @transform_1(%arg0: i32, %arg1: i32) -> (i32, i32) {
    %c0_i32 = arith.constant 0 : i32
    %c0_i32_0 = arith.constant 0 : i32
    return %c0_i32, %arg1 : i32, i32
  }
  func.func @transform_2(%arg0: i32, %arg1: i32) -> (i32, i32) {
    %c0_i32 = arith.constant 0 : i32
    %c0_i32_0 = arith.constant 0 : i32
    return %c0_i32, %arg1 : i32, i32
  }
  func.func @transform_3(%arg0: i32, %arg1: i32) -> (i32, i32) {
    %c0_i32 = arith.constant 0 : i32
    return %arg0, %arg1 : i32, i32
  }
}

</mosaic_0001>

<bundles_post_ra>
// kernel: tpu_custom_call.1
= control target key start
LH: loop header
LB: loop body
LE: loop exit
PB: predicated region body
PF: predicated region fallthrough
CT: control target
= control target key end

     0   :  { %8 = vsyncpa [#allocation3], 0  ;;  %s546_s0 = inlined_call_operand.hbm [shape: f32[8,384], index: 0, kind: input, shape index: {}]   ;;  %s547_s1 = inlined_call_operand.hbm [shape: bf16[384,128], index: 1, kind: input, shape index: {}]   ;;  %s548_s2 = inlined_call_operand.vmem [shape: f32[1,128], index: 2, kind: input, shape index: {}]   ;;  %s549_s3 = inlined_call_operand.hbm [shape: f32[8,128], index: 3, kind: output, shape index: {}]  }
   0x1   :  { %9 = vsyncpa [#allocation6], 0 }
   0x2   :  { %10 = vsyncpa [#allocation4], 0  ;;  %s16_s14 = sshll.u32 %s546_s0, 4  ;;  %s509_s15 = smov [#allocation2]   ;;  %s17_s14 = int_to_ptr.hbm [resolvable:$true] %s16_s14 }
   0x3   :  { %s18_s16 = sshll.u32 %s509_s15, 4  ;;  %s26_s19 = sshll.u32 %s547_s1, 4  ;;  %s19_s16 = int_to_ptr.vmem [resolvable:$true] %s18_s16  ;;  %s27_s19 = int_to_ptr.hbm [resolvable:$true] %s26_s19 }
   0x4   :  { %21 = dma.hbm_to_vmem [thread:$0]  %s17_s14, 384, %s19_s16, [#allocation3]  }
   0x5   :  { %s510_s20 = smov [#allocation5]   ;;  %s511_s22 = smov 64  }
   0x6   :  { %s28_s21 = sshll.u32 %s510_s20, 4  ;;  %s512_s23 = smov 4   ;;  %s29_s21 = int_to_ptr.vmem [resolvable:$true] %s28_s21 }
   0x7   :  { %34 = dma.hbm_to_vmem [thread:$0]  %s27_s19, 3072, %s29_s21, [#allocation6], %s511_s22, %s511_s22, %s512_s23  }
   0x8   :  { %503 = dma.done.wait [#allocation3], 384  }
   0x9   :  { %504 = vsyncadd [#allocation3], 4294966912 }
   0xa   :  { %505 = dma.done.wait [#allocation6], 3072  }
   0xb   :  { %506 = vsyncadd [#allocation6], 4294964224  ;;  %v408_v0 = vld [vmem:[#allocation5 + $0x38] sm:$0xff]  ;;  %v407_v3 = vld [vmem:[#allocation5 + $0x30] sm:$0xff]  ;;  %s513_s24 = smov [#allocation7]   ;;  %s294_s28 = sshll.u32 %s549_s3, 4  ;;  %s295_s28 = int_to_ptr.hbm [resolvable:$true] %s294_s28 }
   0xc   :  { %v416_v1 = vld [vmem:[#allocation5 + $0x78] sm:$0xff]  ;;  %247 = vmatpush.bf16.msra.mxu0 %v408_v0  ;;  %v415_v4 = vld [vmem:[#allocation5 + $0x70] sm:$0xff]  ;;  %v406_v6 = vld [vmem:[#allocation5 + $0x28] sm:$0xff]  ;;  %s292_s25 = sshll.u32 %s513_s24, 4  ;;  %s293_s25 = int_to_ptr.vmem [resolvable:$true] %s292_s25 }
   0xd   :  { %v424_v2 = vld [vmem:[#allocation5 + $0xb8] sm:$0xff]  ;;  %260 = vmatpush.bf16.msra.mxu1 %v416_v1  ;;  %v423_v5 = vld [vmem:[#allocation5 + $0xb0] sm:$0xff]  ;;  %v414_v7 = vld [vmem:[#allocation5 + $0x68] sm:$0xff] }
   0xe   :  { %273 = vmatpush.bf16.msra.mxu2 %v424_v2  ;;  %v422_v8 = vld [vmem:[#allocation5 + $0xa8] sm:$0xff]  ;;  %v405_v9 = vld [vmem:[#allocation5 + $0x20] sm:$0xff]  ;;  %v404_v12 = vld [vmem:[#allocation5 + $0x18] sm:$0xff] }
   0xf   :  { %v413_v10 = vld [vmem:[#allocation5 + $0x60] sm:$0xff]  ;;  %v412_v13 = vld [vmem:[#allocation5 + $0x58] sm:$0xff]  ;;  %v403_v15 = vld [vmem:[#allocation5 + $0x10] sm:$0xff] }
  0x10   :  { %248 = vmatpush.bf16.msra.mxu0 %v407_v3  ;;  %v421_v11 = vld [vmem:[#allocation5 + $0xa0] sm:$0xff]  ;;  %v420_v14 = vld [vmem:[#allocation5 + $0x98] sm:$0xff]  ;;  %v411_v16 = vld [vmem:[#allocation5 + $0x50] sm:$0xff] }
  0x11   :  { %261 = vmatpush.bf16.msra.mxu1 %v415_v4  ;;  %v419_v17 = vld [vmem:[#allocation5 + $0x90] sm:$0xff]  ;;  %v402_v18 = vld [vmem:[#allocation5 + $0x8] sm:$0xff]  ;;  %v401_v21 = vld [vmem:[#allocation5] sm:$0xff] }
  0x12   :  { %274 = vmatpush.bf16.msra.mxu2 %v423_v5  ;;  %v410_v19 = vld [vmem:[#allocation5 + $0x48] sm:$0xff]  ;;  %v409_v22 = vld [vmem:[#allocation5 + $0x40] sm:$0xff]  ;;  %v46_v24 = vld [vmem:[#allocation2 + $0x8] sm:$0xff] }
  0x13   :  { %v418_v20 = vld [vmem:[#allocation5 + $0x88] sm:$0xff]  ;;  %v417_v25 = vld [vmem:[#allocation5 + $0x80] sm:$0xff]  ;;  %v47_v26 = vld [vmem:[#allocation2 + $0x10] sm:$0xff]  ;;  %v49_v28 = vpack.c.bf16 %v46_v24, %v46_v24 }
  0x14   :  { %249 = vmatpush.bf16.msra.mxu0 %v406_v6  ;;  %v45_v23 = vld [vmem:[#allocation2] sm:$0xff]  ;;  %v50_v29 = vpack.c.bf16 %v47_v26, %v47_v26 }
  0x15   :  { %262 = vmatpush.bf16.msra.mxu1 %v414_v7  ;;  %v48_v27 = vpack.c.bf16 %v45_v23, %v45_v23  ;;  %v430_v30 = vld [vmem:[%s548_s2] ss:$0 sm:$0xff] }
  0x16   :  { %275 = vmatpush.bf16.msra.mxu2 %v422_v8 }
  0x18   :  { %250 = vmatpush.bf16.msra.mxu0 %v405_v9 }
  0x19   :  { %263 = vmatpush.bf16.msra.mxu1 %v413_v10 }
  0x1a   :  { %276 = vmatpush.bf16.msra.mxu2 %v421_v11 }
  0x1c   :  { %251 = vmatpush.bf16.msra.mxu0 %v404_v12 }
  0x1d   :  { %264 = vmatpush.bf16.msra.mxu1 %v412_v13 }
  0x1e   :  { %277 = vmatpush.bf16.msra.mxu2 %v420_v14 }
  0x20   :  { %252 = vmatpush.bf16.msra.mxu0 %v403_v15 }
  0x21   :  { %265 = vmatpush.bf16.msra.mxu1 %v411_v16 }
  0x22   :  { %278 = vmatpush.bf16.msra.mxu2 %v419_v17 }
  0x24   :  { %253 = vmatpush.bf16.msra.mxu0 %v402_v18 }
  0x25   :  { %266 = vmatpush.bf16.msra.mxu1 %v410_v19 }
  0x26   :  { %279 = vmatpush.bf16.msra.mxu2 %v418_v20 }
  0x28   :  { %254 = vmatpush.bf16.msra.mxu0 %v401_v21 }
  0x29   :  { %267 = vmatpush.bf16.msra.mxu1 %v409_v22 }
  0x2a   :  { %280 = vmatpush.bf16.msra.mxu2 %v417_v25 }
  0x2b   :  { %255 = vmatmul.bf16.vlgmr.msra.gmra.mxu0 %v48_v27 }
  0x2c   :  { %268 = vmatmul.bf16.vlgmr.msra.gmra.mxu1 %v49_v28 }
  0x2d   :  { %281 = vmatmul.bf16.vlgmr.msra.gmra.mxu2 %v50_v29 }
  0xa8   :  { %v256_v31 = vpop.f32.mrf.mxu0 }
  0xa9   :  { %v269_v32 = vpop.f32.mrf.mxu1  ;;  %v257_v33 = vadd.f32 %v430_v30, %v256_v31 }
  0xab   :  { %v270_v34 = vadd.f32 %v269_v32, %v257_v33 }
  0xb0   :  { %v282_v35 = vpop.f32.mrf.mxu2  ;;  %v258_v37 = vpop.f32.mrf.mxu0 }
  0xb1   :  { %v283_v36 = vadd.f32 %v282_v35, %v270_v34  ;;  %v271_v38 = vpop.f32.mrf.mxu1 }
  0xb3   :  { %286 = vst [vmem:[#allocation7] sm:$0xff] %v283_v36 }
  0xb4   :  { %297 = dma.vmem_to_hbm [thread:$0]  %s293_s25, 128, %s295_s28, [#allocation4]  }
  0xb8   :  { %v284_v39 = vpop.f32.mrf.mxu2 }
  0xb9   :  { %507 = dma.done.wait [#allocation4], 128  }
  0xba   :  { %508 = vsyncadd [#allocation4], 4294967168 }
  0xbb   :  { %302 = vsyncpa [#allocation3], 1 }
  0xbc   :  { %303 = vsyncpa [#allocation6], 1 }
  0xbd   :  { %304 = vsyncpa [#allocation4], 1 }

</bundles_post_ra>
